<compile_context>
chip_gen: v6e
topology: v6e:2x2x1
jax: 0.10.0
libtpu: 0.0.40
codegen_flags: <defaults>
</compile_context>

<pallas_src>
import jax
import jax.numpy as jnp
from jax.experimental import pallas as pl
from jax.experimental.pallas import tpu as pltpu


def _round_up(x, m):
    return (x + m - 1) // m * m


def mlp_critic_kernel(obs_ref, w1_ref, b1_ref, w2_ref, b2_ref, w3_ref, b3_ref,
                      out_ref):
    wdt = w1_ref.dtype
    x = obs_ref[...]                                    # [obs_dim, tm] (compute dtype)

    # Hidden layers: MXU matmul (f32 accumulation), f32 bias + tanh, lane-dense [H, tm].
    h1 = jnp.tanh(
        jnp.dot(w1_ref[...], x, preferred_element_type=jnp.float32) + b1_ref[...]
    )                                                   # [H1, tm] f32
    h2 = jnp.tanh(
        jnp.dot(w2_ref[...], h1.astype(wdt), preferred_element_type=jnp.float32)
        + b2_ref[...]
    )                                                   # [H2, tm] f32

    # Value head: [1, H2] @ [H2, tm] -> lane-dense [1, tm]; no transpose needed.
    v = (jnp.dot(w3_ref[...], h2.astype(wdt), preferred_element_type=jnp.float32)
         + b3_ref[...])
    out_ref[0] = v.astype(out_ref.dtype)                # (1, tm) into the (1, 1, tm) block


def _choose_tile(B, tm):
    """Batch tile (multiple of 128).  Collapse to exactly 2 tiles for small/medium
    batches (v7x has 2 TensorCores to feed); cap at tm for very large batches."""
    cap = max(128, _round_up(tm, 128))
    b_pad = _round_up(B, 128)
    if b_pad <= 128:
        return 128
    if b_pad <= 2 * cap:
        return max(128, _round_up(b_pad // 2, 128))
    return cap


def mlp_critic_forward(obs, params, *, tm=4096, compute_dtype=jnp.bfloat16):
    """obs: [B, obs_dim].  Returns values [B] (float32, last dim squeezed)."""
    w1, b1, w2, b2, w3, b3 = params                     # PyTorch orientation: w [out, in]
    B, obs_dim = obs.shape
    h1_dim, h2_dim = w1.shape[0], w2.shape[0]

    cdt = jnp.dtype(compute_dtype)
    # Stream obs/weights in the compute dtype; biases (and all accumulation) stay f32.
    w1c, w2c, w3c = (w.astype(cdt) for w in (w1, w2, w3))
    b1f, b2f, b3f = (b.astype(jnp.float32) for b in (b1, b2, b3))

    tile = _choose_tile(B, tm)
    Bp = _round_up(B, tile)
    num_tiles = Bp // tile

    # Transposed, padded obs: [obs_dim, Bp] so batch sits on the 128-lane axis.
    obs_t = jnp.pad(obs.astype(cdt).T, ((0, 0), (0, Bp - B)))

    def fixed(shape):  # grid-invariant full-array block (DMA'd once, VMEM-resident)
        return pl.BlockSpec(shape, lambda i, _n=len(shape): (0,) * _n)

    out = pl.pallas_call(
        mlp_critic_kernel,
        out_shape=jax.ShapeDtypeStruct((num_tiles, 1, tile), jnp.float32),
        grid=(num_tiles,),
        in_specs=[
            pl.BlockSpec((obs_dim, tile), lambda i: (0, i)),   # obs tile [obs_dim, tm]
            fixed((h1_dim, obs_dim)), fixed((h1_dim, 1)),      # layer 1: w [out,in], b [out,1]
            fixed((h2_dim, h1_dim)),  fixed((h2_dim, 1)),      # layer 2
            fixed((1, h2_dim)),       fixed((1, 1)),           # value head
        ],
        out_specs=pl.BlockSpec((1, 1, tile), lambda i: (i, 0, 0)),
        compiler_params=pltpu.CompilerParams(
            dimension_semantics=("parallel",)),
    )(obs_t, w1c, b1f, w2c, b2f, w3c, b3f)

    # torch.squeeze(v_net(obs), -1): lane-dense slab -> [B] (drop batch padding).
    return out.reshape(Bp)[:B]


def init_params(key, obs_dim, hidden_sizes):
    """Deterministic synthetic parameters, same shapes/init as the nn.Linear layers
    (weights kept in PyTorch [out, in] orientation, biases stored [out, 1])."""
    sizes = [obs_dim] + list(hidden_sizes) + [1]
    params = []
    for j in range(len(sizes) - 1):
        key, kw, kb = jax.random.split(key, 3)
        fan_in, fan_out = sizes[j], sizes[j + 1]
        bound = 1.0 / jnp.sqrt(jnp.float32(fan_in))
        w = jax.random.uniform(kw, (fan_out, fan_in), jnp.float32, -bound, bound)
        b = jax.random.uniform(kb, (fan_out, 1), jnp.float32, -bound, bound)
        params += [w, b]
    return tuple(params)


def reference_forward(obs, params):
    w1, b1, w2, b2, w3, b3 = params
    h1 = jnp.tanh(obs @ w1.T + b1.T)
    h2 = jnp.tanh(h1 @ w2.T + b2.T)
    v = h2 @ w3.T + b3.T
    return jnp.squeeze(v, -1)


if __name__ == "__main__":
    key = jax.random.PRNGKey(0)
    B, obs_dim = 200, 16          # non-multiple-of-tile batch exercises padding + 2-tile grid
    hidden_sizes = (64, 64)       # spinup default MLP width

    key, k_obs = jax.random.split(key)
    obs = jax.random.normal(k_obs, (B, obs_dim), jnp.float32)
    params = init_params(key, obs_dim, hidden_sizes)

    v_ref = reference_forward(obs, params)

    # Exact-precision path: f32 streaming, tight tolerance vs. the JAX reference.
    v32 = jax.block_until_ready(
        mlp_critic_forward(obs, params, compute_dtype=jnp.float32))
    assert v32.shape == (B,), v32.shape
    assert jnp.allclose(v32, v_ref, atol=1e-5, rtol=1e-5)

    # Default fast path: bf16 streaming, f32 accumulation (looser tolerance).
    v16 = jax.block_until_ready(mlp_critic_forward(obs, params))
    assert v16.shape == (B,), v16.shape
    assert jnp.allclose(v16, v_ref, atol=5e-2, rtol=5e-2)

    print("KERNEL_OK")
</pallas_src>

<mosaic_0001>
module attributes {stable_mosaic.version = 11 : i64} {
  func.func @mlp_critic_kernel(%arg0: i32, %arg1: memref<16x128xf32, #tpu.memory_space<vmem>>, %arg2: memref<64x16xf32, #tpu.memory_space<vmem>>, %arg3: memref<64x1xf32, #tpu.memory_space<vmem>>, %arg4: memref<64x64xf32, #tpu.memory_space<vmem>>, %arg5: memref<64x1xf32, #tpu.memory_space<vmem>>, %arg6: memref<1x64xf32, #tpu.memory_space<vmem>>, %arg7: memref<1x1xf32, #tpu.memory_space<vmem>>, %arg8: memref<1x1x128xf32, #tpu.memory_space<vmem>>) attributes {dimension_semantics = [#tpu.dimension_semantics<parallel>], iteration_bounds = array<i64: 2>, scalar_prefetch = 0 : i64, scratch_operands = 0 : i64, tpu.core_type = #tpu.core_type<tc>, window_params = [{transform_indices = @transform_0, window_bounds = array<i64: 16, 128>}, {pipeline_mode = #tpu.pipeline_mode<synchronous>, transform_indices = @transform_1, window_bounds = array<i64: 64, 16>}, {pipeline_mode = #tpu.pipeline_mode<synchronous>, transform_indices = @transform_2, window_bounds = array<i64: 64, 1>}, {pipeline_mode = #tpu.pipeline_mode<synchronous>, transform_indices = @transform_3, window_bounds = array<i64: 64, 64>}, {pipeline_mode = #tpu.pipeline_mode<synchronous>, transform_indices = @transform_4, window_bounds = array<i64: 64, 1>}, {pipeline_mode = #tpu.pipeline_mode<synchronous>, transform_indices = @transform_5, window_bounds = array<i64: 1, 64>}, {pipeline_mode = #tpu.pipeline_mode<synchronous>, transform_indices = @transform_6, window_bounds = array<i64: 1, 1>}, {transform_indices = @transform_7, window_bounds = array<i64: 1, 1, 128>}]} {
    %c0 = arith.constant 0 : index
    %c0_0 = arith.constant 0 : index
    %0 = vector.load %arg1[%c0, %c0_0] : memref<16x128xf32, #tpu.memory_space<vmem>>, vector<16x128xf32>
    %c0_1 = arith.constant 0 : index
    %c0_2 = arith.constant 0 : index
    %1 = vector.load %arg2[%c0_1, %c0_2] : memref<64x16xf32, #tpu.memory_space<vmem>>, vector<64x16xf32>
    %cst = arith.constant dense<0.000000e+00> : vector<64x128xf32>
    %2 = tpu.matmul %1, %0, %cst {dimension_numbers = #tpu.dot_dimension_numbers<[1], [0], [0], [1], [0, 0, 1, 1], [], []>} : vector<64x16xf32>, vector<16x128xf32>, vector<64x128xf32> -> vector<64x128xf32>
    %c0_3 = arith.constant 0 : index
    %c0_4 = arith.constant 0 : index
    %3 = vector.load %arg3[%c0_3, %c0_4] : memref<64x1xf32, #tpu.memory_space<vmem>>, vector<64x1xf32>
    %4 = vector.broadcast %3 : vector<64x1xf32> to vector<64x128xf32>
    %5 = arith.addf %2, %4 : vector<64x128xf32>
    %6 = math.tanh %5 : vector<64x128xf32>
    %c0_5 = arith.constant 0 : index
    %c0_6 = arith.constant 0 : index
    %7 = vector.load %arg4[%c0_5, %c0_6] : memref<64x64xf32, #tpu.memory_space<vmem>>, vector<64x64xf32>
    %cst_7 = arith.constant dense<0.000000e+00> : vector<64x128xf32>
    %8 = tpu.matmul %7, %6, %cst_7 {dimension_numbers = #tpu.dot_dimension_numbers<[1], [0], [0], [1], [0, 0, 1, 1], [], []>} : vector<64x64xf32>, vector<64x128xf32>, vector<64x128xf32> -> vector<64x128xf32>
    %c0_8 = arith.constant 0 : index
    %c0_9 = arith.constant 0 : index
    %9 = vector.load %arg5[%c0_8, %c0_9] : memref<64x1xf32, #tpu.memory_space<vmem>>, vector<64x1xf32>
    %10 = vector.broadcast %9 : vector<64x1xf32> to vector<64x128xf32>
    %11 = arith.addf %8, %10 : vector<64x128xf32>
    %12 = math.tanh %11 : vector<64x128xf32>
    %c0_10 = arith.constant 0 : index
    %c0_11 = arith.constant 0 : index
    %13 = vector.load %arg6[%c0_10, %c0_11] : memref<1x64xf32, #tpu.memory_space<vmem>>, vector<1x64xf32>
    %cst_12 = arith.constant dense<0.000000e+00> : vector<1x128xf32>
    %14 = tpu.matmul %13, %12, %cst_12 {dimension_numbers = #tpu.dot_dimension_numbers<[1], [0], [0], [1], [0, 0, 1, 1], [], []>} : vector<1x64xf32>, vector<64x128xf32>, vector<1x128xf32> -> vector<1x128xf32>
    %c0_13 = arith.constant 0 : index
    %c0_14 = arith.constant 0 : index
    %15 = vector.load %arg7[%c0_13, %c0_14] : memref<1x1xf32, #tpu.memory_space<vmem>>, vector<1x1xf32>
    %16 = vector.broadcast %15 : vector<1x1xf32> to vector<1x128xf32>
    %17 = arith.addf %14, %16 : vector<1x128xf32>
    %c0_15 = arith.constant 0 : index
    %c0_16 = arith.constant 0 : index
    %c0_17 = arith.constant 0 : index
    %18 = vector.load %arg8[%c0_15, %c0_16, %c0_17] : memref<1x1x128xf32, #tpu.memory_space<vmem>>, vector<1x1x128xf32>
    %19 = vector.shape_cast %18 : vector<1x1x128xf32> to vector<1x128xf32>
    %20 = vector.shape_cast %17 : vector<1x128xf32> to vector<1x1x128xf32>
    tpu.vector_store %arg8[%c0_15, %c0_16, %c0_17], %20 {strides = array<i32>} : memref<1x1x128xf32, #tpu.memory_space<vmem>>, vector<1x1x128xf32>,
    return
  }
  func.func @transform_0(%arg0: i32) -> (i32, i32) {
    %c0_i32 = arith.constant 0 : i32
    %c0_i32_0 = arith.constant 0 : i32
    return %c0_i32, %arg0 : i32, i32
  }
  func.func @transform_1(%arg0: i32) -> (i32, i32) {
    %c0_i32 = arith.constant 0 : i32
    %c0_i32_0 = arith.constant 0 : i32
    %c0_i32_1 = arith.constant 0 : i32
    return %c0_i32, %c0_i32_0 : i32, i32
  }
  func.func @transform_2(%arg0: i32) -> (i32, i32) {
    %c0_i32 = arith.constant 0 : i32
    %c0_i32_0 = arith.constant 0 : i32
    %c0_i32_1 = arith.constant 0 : i32
    return %c0_i32, %c0_i32_0 : i32, i32
  }
  func.func @transform_3(%arg0: i32) -> (i32, i32) {
    %c0_i32 = arith.constant 0 : i32
    %c0_i32_0 = arith.constant 0 : i32
    %c0_i32_1 = arith.constant 0 : i32
    return %c0_i32, %c0_i32_0 : i32, i32
  }
  func.func @transform_4(%arg0: i32) -> (i32, i32) {
    %c0_i32 = arith.constant 0 : i32
    %c0_i32_0 = arith.constant 0 : i32
    %c0_i32_1 = arith.constant 0 : i32
    return %c0_i32, %c0_i32_0 : i32, i32
  }
  func.func @transform_5(%arg0: i32) -> (i32, i32) {
    %c0_i32 = arith.constant 0 : i32
    %c0_i32_0 = arith.constant 0 : i32
    %c0_i32_1 = arith.constant 0 : i32
    return %c0_i32, %c0_i32_0 : i32, i32
  }
  func.func @transform_6(%arg0: i32) -> (i32, i32) {
    %c0_i32 = arith.constant 0 : i32
    %c0_i32_0 = arith.constant 0 : i32
    %c0_i32_1 = arith.constant 0 : i32
    return %c0_i32, %c0_i32_0 : i32, i32
  }
  func.func @transform_7(%arg0: i32) -> (i32, i32, i32) {
    %c0_i32 = arith.constant 0 : i32
    %c0_i32_0 = arith.constant 0 : i32
    %c0_i32_1 = arith.constant 0 : i32
    return %arg0, %c0_i32, %c0_i32_0 : i32, i32, i32
  }
}

</mosaic_0001>

<bundles_post_ra>
// kernel: tpu_custom_call.1
= control target key start
LH: loop header
LB: loop body
LE: loop exit
PB: predicated region body
PF: predicated region fallthrough
CT: control target
= control target key end

     0   :  { %s1395_s0 = inlined_call_operand.vmem [shape: f32[16,256], index: 0, kind: input, shape index: {}]   ;;  %s1396_s1 = inlined_call_operand.vmem [shape: f32[64,16], index: 1, kind: input, shape index: {}]   ;;  %s1397_s2 = inlined_call_operand.vmem [shape: f32[64,1], index: 2, kind: input, shape index: {}]   ;;  %s1398_s3 = inlined_call_operand.vmem [shape: f32[64,64], index: 3, kind: input, shape index: {}]   ;;  %s1399_s4 = inlined_call_operand.vmem [shape: f32[64,1], index: 4, kind: input, shape index: {}]   ;;  %s1400_s5 = inlined_call_operand.vmem [shape: f32[1,64], index: 5, kind: input, shape index: {}]   ;;  %s1401_s6 = inlined_call_operand.<no memory space> [shape: f32[1,1], index: 6, kind: input, shape index: {}]   ;;  %s1402_s7 = inlined_call_operand.hbm [shape: f32[2,1,128], index: 7, kind: output, shape index: {}]  }
   0x1   :  { %v12_v0 = vstv %s1401_s6 }
   0x2   :  { %13 = vst [vmem:[#allocation2] sm:$0x1] %v12_v0 }
   0x3   :  { %14 = vsyncpa [#allocation5], 0 }
   0x4   :  { %16 = vsyncpa [#allocation5 + $0x1], 0  ;;  %s1176_s26 = smov 0   ;;  %s1178_s27 = smov 0  }
   0x5   :  { %s1180_s28 = smov 0   ;;  %s1182_s29 = smov 0  }
   0x6 LB: > { %s865_s6 = sadd.s32 4294967295, %s1127_s29   ;;  %s866_s30 = sadd.s32 4294967294, %s1127_s29   ;;  %s1127_s29 = sphi %s1182_s29, %s1408_s29   ;;  %s1123_s28 = sphi %s1180_s28, %s1407_s28   ;;  %s1119_s27 = sphi %s1178_s27, %s1406_s27   ;;  %s1115_s26 = sphi %s1176_s26, %s1405_s26  }
   0x7   : > { %s1199_s8 = sadd.s32 1, %s1127_s29   ;;  %s29_s9 = sadd.s32 1, %s1123_s28 }
   0x8   : > { %s26_s10 = ssub.s32 %s1127_s29, %s1199_s8  ;;  %p36_p0 = scmp.ne.s32.totalorder %s1123_s28, %s1119_s27 }
   0x9   : > { %p27_p1 = scmp.eq.s32.totalorder %s26_s10, 0  ;;  %p37_p2 = scmp.eq.s32.totalorder %s1127_s29, 0 }
   0xa   : > { %p192_p3 = scmp.eq.s32.totalorder %s865_s6, 1  ;;  %p197_p4 = scmp.ne.s32.totalorder %s1119_s27, %s1115_s26 }
   0xb   : > { %s1212_s11 = scalar_select %p27_p1, %s1123_s28, %s29_s9  }
   0xc   : > { %p38_p5 = por %p37_p2, %p36_p0  ;;  %p1214_p6 = por %p192_p3, %p36_p0 }
   0xd   : > { %p198_p7 = scmp.eq.s32.totalorder %s866_s30, 1  ;;  %p868_p9 = scmp.ge.s32.totalorder %s1127_s29, 2 }
   0xf   : > { %p1218_p8 = por %p198_p7, %p197_p4  ;;  %232 = sbr.rel (%p868_p9) target bundleno = 25 (0x19), region = 40 }
  0x14   : > { %235 = sbr.rel (!%p38_p5) target bundleno = 25 (0x19), region = 44  ;;  %s237_s14 = sand.u32 (%p38_p5), 1, %s1123_s28  }
  0x15   : > { %s870_s15 = sshll.u32 (%p38_p5), %s1127_s29, 3  ;;  %s869_s16 = sshll.u32 (%p38_p5), %s237_s14, 4 }
  0x16   : > { %s241_s19 = scalar_lea.vmem (%p38_p5), %s1395_s0, %s870_s15  ;;  %s239_s20 = scalar_lea.vmem (%p38_p5), [#allocation3], %s869_s16 }
  0x17   : > { %v272_v1 = vld [vmem:[%s241_s19] sm:$0xff] (%p38_p5)  ;;  %v274_v2 = vld [vmem:[%s241_s19 + $0x10] sm:$0xff] (%p38_p5) }
  0x18   : > { %273 = vst [vmem:[%s239_s20] sm:$0xff] (%p38_p5), %v272_v1  ;;  %275 = vst [vmem:[%s239_s20 + $0x8] sm:$0xff] (%p38_p5), %v274_v2 }
  0x19 PF: > { %p871_p10 = scmp.ge.s32.totalorder %s1127_s29, 1  ;;  %p280_p11 = scmp.lt.s32.totalorder %s1127_s29, 3 }
  0x1b   : > { %p281_p12 = pnand %p871_p10, %p280_p11 }
  0x1c   : > { %s1233_s21 = sand.u32 (!%p281_p12), 1, %s1119_s27   ;;  %s890_s19 = sshll.u32 (!%p281_p12), %s865_s6, 4 }
  0x1d   : > { %284 = sbr.rel (%p281_p12) target bundleno = 722 (0x2d2), region = 82  ;;  %s872_s24 = sshll.u32 (!%p281_p12), %s1233_s21, 4 }
  0x1e   : > { %s289_s9 = scalar_lea.vmem (!%p281_p12), [#allocation3], %s872_s24  ;;  %s316_s20 = scalar_lea.vmem (!%p281_p12), [#allocation4], %s1233_s21 }
  0x1f   : > { %s805_s22 = sshll.u32 (!%p281_p12), %s316_s20, 4  ;;  %s1358_s25 = scalar_lea.hbm (!%p281_p12), %s1402_s7, %s890_s19  ;;  %s806_s22 = int_to_ptr.vmem [resolvable:$true] %s805_s22 }
  0x20   : > { %s793_s30 = scalar_lea.sflag (!%p281_p12), [#allocation5], %s1233_s21  ;;  %s1132_s6 = smov (!%p281_p12), [#allocation4]  }
  0x21   : > { %s1071_s10 = sshll.u32 (!%p281_p12), %s1132_s6, 4  ;;  %s1072_s10 = int_to_ptr.vmem [resolvable:$false] %s1071_s10 }
  0x22   : > { %v319_v3 = vld [vmem:[%s1396_s1] sm:$0xff]  ;;  %vm375_vm0 = vcmask 130048   ;;  %v1129_v4 = vmov 0   ;;  %v334_v5 = vld [vmem:[%s1397_s2 + $0x38] sm:$0xff]  ;;  %v333_v8 = vld [vmem:[%s1397_s2 + $0x30] sm:$0xff]  ;;  %vm569_vm1 = vcmask 523264   ;;  %p1074_p2 = scmp.lt.s32.totalorder %s806_s22, %s1072_s10 }
  0x23   : > { %932 = vmatprep.mubr.msk.f32.mxu0 %vm375_vm0, %v319_v3  ;;  %1033 = vset.pattern.permute.xlu0 %v1129_v4  ;;  %v318_v6 = vld [vmem:[%s289_s9 + $0x8] sm:$0xff]  ;;  %v317_v7 = vld [vmem:[%s289_s9] sm:$0xff]  ;;  %vm1131_vm2 = vmmov 0   ;;  %s1067_s9 = scalar_lea.vmem %s806_s22, 16  ;;  %s1073_s14 = scalar_lea.vmem %s1072_s10, 32 }
  0x24   : > { %1034 = vset.pattern.permute.xlu1 %v1129_v4  ;;  %372 = vperm.xlu0 %1033, %v334_v5   ;;  %v332_v9 = vld [vmem:[%s1397_s2 + $0x28] sm:$0xff]  ;;  %v321_v11 = vld [vmem:[%s1396_s1 + $0x10] sm:$0xff]  ;;  %v331_v12 = vld [vmem:[%s1397_s2 + $0x20] sm:$0xff]  ;;  %p1068_p13 = scmp.ne.s32.totalorder %s806_s22, %s1067_s9  ;;  %p1075_p3 = scmp.lt.s32.totalorder %s1073_s14, %s1067_s9 }
  0x25   : > { %928 = vmatprep.subr.mxu0 %v318_v6  ;;  %v320_v10 = vld [vmem:[%s1396_s1 + $0x8] sm:$0xff]  ;;  %362 = vperm.xlu1 %1034, %v332_v9   ;;  %v330_v13 = vld [vmem:[%s1397_s2 + $0x18] sm:$0xff]  ;;  %v323_v15 = vld [vmem:[%s1396_s1 + $0x20] sm:$0xff] }
  0x26   : > { %929 = vmatpush3.msra.mxu0 %v318_v6  ;;  %v322_v14 = vld [vmem:[%s1396_s1 + $0x18] sm:$0xff]  ;;  %v329_v16 = vld [vmem:[%s1397_s2 + $0x10] sm:$0xff]  ;;  %v328_v17 = vld [vmem:[%s1397_s2 + $0x8] sm:$0xff]  ;;  %p1069_p0 = pnand %p1068_p13, %p1214_p6  ;;  %p1076_p4 = por %p1075_p3, %p1074_p2 }
  0x27   : > { %930 = vmatprep.subr.mxu0 %v317_v7  ;;  %v324_v18 = vld [vmem:[%s1396_s1 + $0x28] sm:$0xff]  ;;  %v325_v19 = vld [vmem:[%s1396_s1 + $0x30] sm:$0xff]  ;;  %v327_v20 = vld [vmem:[%s1397_s2] sm:$0xff] }
  0x28   : > { %931 = vmatpush3.msra.mxu0 %v317_v7  ;;  %367 = vperm.xlu0 %1033, %v333_v8   ;;  %v528_v21 = vld [vmem:[%s1399_s4 + $0x38] sm:$0xff]  ;;  %v527_v23 = vld [vmem:[%s1399_s4 + $0x30] sm:$0xff]  ;;  %v526_v24 = vld [vmem:[%s1399_s4 + $0x28] sm:$0xff]  ;;  %v1130_v7 = vmov 0.0   ;;  %p1070_p1 = pneg %p1069_p0 }
  0x29   : > { %933 = vmatmul.mubr.msk.f32.vlgmr.msra.gmra.mxu0 %vm375_vm0, %v320_v10  ;;  %357 = vperm.xlu1 %1034, %v331_v12   ;;  %v326_v22 = vld [vmem:[%s1396_s1 + $0x38] sm:$0xff]  ;;  %v525_v25 = vld [vmem:[%s1399_s4 + $0x20] sm:$0xff]  ;;  %v523_v27 = vld [vmem:[%s1399_s4 + $0x10] sm:$0xff] }
  0x2a   : > { %935 = vmatprep.mubr.msk.f32.mxu0 %vm375_vm0, %v321_v11  ;;  %v524_v26 = vld [vmem:[%s1399_s4 + $0x18] sm:$0xff]  ;;  %v522_v28 = vld [vmem:[%s1399_s4 + $0x8] sm:$0xff]  ;;  %v521_v29 = vld [vmem:[%s1399_s4] sm:$0xff]  ;;  %972 = vmatprep.subr.mxu0 %v1130_v7  ;;  %p1077_p5 = pnand %p1076_p4, %p1070_p1 }
  0x2b   : > { %v708_v30 = vld [vmem:[#allocation2] sm:$0x1]  ;;  %v514_v0 = vld [vmem:[%s1398_s3 + $0x8] sm:$0xff]  ;;  %v515_v1 = vld [vmem:[%s1398_s3 + $0x10] sm:$0xff] }
  0x2c   : > { %352 = vperm.xlu0 %1033, %v330_v13   ;;  %v513_v31 = vld [vmem:[%s1398_s3] sm:$0xff]  ;;  %v516_v2 = vld [vmem:[%s1398_s3 + $0x18] sm:$0xff]  ;;  %v518_v4 = vld [vmem:[%s1398_s3 + $0x28] sm:$0xff] }
  0x2d   : > { %936 = vmatmul.mubr.msk.f32.gmra.mxu0 %vm375_vm0, %v322_v14  ;;  %347 = vperm.xlu1 %1034, %v329_v16   ;;  %v517_v3 = vld [vmem:[%s1398_s3 + $0x20] sm:$0xff]  ;;  %v519_v5 = vld [vmem:[%s1398_s3 + $0x30] sm:$0xff]  ;;  %v520_v6 = vld [vmem:[%s1398_s3 + $0x38] sm:$0xff] }
  0x2e   : > { %938 = vmatprep.mubr.msk.f32.mxu0 %vm375_vm0, %v323_v15  ;;  %960 = vmatprep.mubr.msk.f32.mxu1 %vm569_vm1, %v513_v31 }
  0x30   : > { %342 = vperm.xlu0 %1033, %v328_v17  }
  0x31   : > { %939 = vmatmul.mubr.msk.f32.gmra.mxu0 %vm375_vm0, %v324_v18  ;;  %337 = vperm.xlu1 %1034, %v327_v20  }
  0x32   : > { %941 = vmatprep.mubr.msk.f32.mxu0 %vm375_vm0, %v325_v19 }
  0x34   : > { %566 = vperm.xlu0 %1033, %v528_v21  }
  0x35   : > { %942 = vmatmul.mubr.msk.f32.gmra.mxu0 %vm375_vm0, %v326_v22  ;;  %561 = vperm.xlu1 %1034, %v527_v23  }
  0x36   : > { %988 = vmatprep.mubr.msk.f32.mxu0 %vm1131_vm2, %v1130_v7 }
  0x38   : > { %556 = vperm.xlu0 %1033, %v526_v24  }
  0x39   : > { %551 = vperm.xlu1 %1034, %v525_v25  }
  0x3c   : > { %546 = vperm.xlu0 %1033, %v524_v26  }
  0x3d   : > { %541 = vperm.xlu1 %1034, %v523_v27  }
  0x40   : > { %536 = vperm.xlu0 %1033, %v522_v28  }
  0x41   : > { %531 = vperm.xlu1 %1034, %v521_v29  }
  0x44   : > { %711 = vperm.xlu0 %1033, %v708_v30  }
  0x9f   : > { %v373_v34 = vpop.permute.xlu0 %372 }
  0xa0   : > { %v363_v36 = vpop.permute.xlu1 %362 }
  0xa3   : > { %v368_v39 = vpop.permute.xlu0 %367 }
  0xa4   : > { %v358_v41 = vpop.permute.xlu1 %357 }
  0xa7   : > { %v353_v47 = vpop.permute.xlu0 %352 }
  0xa8   : > { %v348_v49 = vpop.permute.xlu1 %347 }
  0xab   : > { %v343_v52 = vpop.permute.xlu0 %342 }
  0xac   : > { %v338_v54 = vpop.permute.xlu1 %337 }
  0xaf   : > { %v567_v10 = vpop.permute.xlu0 %566 }
  0xb0   : > { %v562_v12 = vpop.permute.xlu1 %561 }
  0xb3   : > { %v557_v15 = vpop.permute.xlu0 %556 }
  0xb4   : > { %v552_v17 = vpop.permute.xlu1 %551 }
  0xb7   : > { %v547_v23 = vpop.permute.xlu0 %546 }
  0xb8   : > { %v542_v25 = vpop.permute.xlu1 %541 }
  0xbb   : > { %v537_v28 = vpop.permute.xlu0 %536 }
  0xbc   : > { %v532_v30 = vpop.permute.xlu1 %531 }
  0xe9   : > { %v934_v32 = vpop.f32.mrf.mxu0 }
  0xea   : > { %v472_v53 = vadd.f32 %v934_v32, %v343_v52 }
  0xeb   : > { %v466_v33 = vpop.f32.mrf.mxu0 }
  0xec   : > { %v467_v55 = vadd.f32 %v466_v33, %v338_v54 }
  0xed   : > { %v937_v35 = vpop.f32.mrf.mxu0 }
  0xee   : > { %v482_v50 = vadd.f32 %v937_v35, %v353_v47 }
  0xef   : > { %v476_v37 = vpop.f32.mrf.mxu0 }
  0xf0   : > { %v477_v51 = vadd.f32 %v476_v37, %v348_v49 }
  0xf1   : > { %v940_v38 = vpop.f32.mrf.mxu0 }
  0xf2   : > { %v492_v45 = vadd.f32 %v940_v38, %v363_v36 }
  0xf3   : > { %v486_v40 = vpop.f32.mrf.mxu0 }
  0xf4   : > { %v487_v48 = vadd.f32 %v486_v40, %v358_v41  ;;  %v714_v41 = vlaneseq }
  0xf5   : > { %v943_v42 = vpop.f32.mrf.mxu0 }
  0xf6   : > { %v502_v43 = vadd.f32 %v943_v42, %v373_v34  ;;  %v715_v42 = vshrl.u32 %v714_v41, 7 }
  0xf7   : > { %v496_v44 = vpop.f32.mrf.mxu0 }
  0xf8   : > { %1035 = vtanh.f32 %v502_v43  ;;  %v497_v46 = vadd.f32 %v496_v44, %v368_v39  ;;  %v707_v39 = vld [vmem:[%s1400_s5] sm:$0x1]  ;;  %v716_v43 = vsub.s32 0, %v715_v42  ;;  %v712_v44 = vpop.permute.xlu0 %711 }
  0xfa   : > { %1037 = vtanh.f32 %v497_v46 }
  0xfb   : > { %1039 = vtanh.f32 %v492_v45  ;;  %v717_v45 = vrot.slane %v712_v44, %v716_v43 }
  0xfc   : > { %1041 = vtanh.f32 %v487_v48 }
  0xfd   : > { %1043 = vtanh.f32 %v482_v50 }
  0xfe   : > { %1045 = vtanh.f32 %v477_v51 }
  0xff   : > { %1047 = vtanh.f32 %v472_v53 }
 0x100   : > { %1049 = vtanh.f32 %v467_v55 }
 0x105   : > { %v1036_v56 = vpop.eup %1035 }
 0x106   : > { %944 = vmatprep.subr.mxu1 %v1036_v56 }
 0x107   : > { %v1038_v57 = vpop.eup %1037  ;;  %945 = vmatpush3.msra.mxu1 %v1036_v56 }
 0x108   : > { %946 = vmatprep.subr.mxu1 %v1038_v57  ;;  %v1040_v58 = vpop.eup %1039 }
 0x109   : > { %947 = vmatpush3.msra.mxu1 %v1038_v57  ;;  %v1042_v59 = vpop.eup %1041 }
 0x10a   : > { %948 = vmatprep.subr.mxu1 %v1040_v58  ;;  %v1044_v60 = vpop.eup %1043 }
 0x10b   : > { %949 = vmatpush3.msra.mxu1 %v1040_v58  ;;  %v1046_v61 = vpop.eup %1045 }
 0x10c   : > { %950 = vmatprep.subr.mxu1 %v1042_v59  ;;  %v1048_v62 = vpop.eup %1047 }
 0x10d   : > { %951 = vmatpush3.msra.mxu1 %v1042_v59  ;;  %v1050_v63 = vpop.eup %1049 }
 0x10e   : > { %952 = vmatprep.subr.mxu1 %v1044_v60 }
 0x10f   : > { %953 = vmatpush3.msra.mxu1 %v1044_v60 }
 0x110   : > { %954 = vmatprep.subr.mxu1 %v1046_v61 }
 0x111   : > { %955 = vmatpush3.msra.mxu1 %v1046_v61 }
 0x112   : > { %956 = vmatprep.subr.mxu1 %v1048_v62 }
 0x113   : > { %957 = vmatpush3.msra.mxu1 %v1048_v62 }
 0x114   : > { %958 = vmatprep.subr.mxu1 %v1050_v63 }
 0x115   : > { %959 = vmatpush3.msra.mxu1 %v1050_v63 }
 0x116   : > { %961 = vmatmul.mubr.msk.f32.vlgmr.msra.gmra.mxu1 %vm569_vm1, %v514_v0 }
 0x117   : > { %963 = vmatprep.mubr.msk.f32.mxu1 %vm569_vm1, %v515_v1 }
 0x11a   : > { %964 = vmatmul.mubr.msk.f32.gmra.mxu1 %vm569_vm1, %v516_v2 }
 0x11b   : > { %966 = vmatprep.mubr.msk.f32.mxu1 %vm569_vm1, %v517_v3 }
 0x11e   : > { %967 = vmatmul.mubr.msk.f32.gmra.mxu1 %vm569_vm1, %v518_v4 }
 0x11f   : > { %969 = vmatprep.mubr.msk.f32.mxu1 %vm569_vm1, %v519_v5 }
 0x122   : > { %970 = vmatmul.mubr.msk.f32.gmra.mxu1 %vm569_vm1, %v520_v6 }
 0x1d6   : > { %v962_v8 = vpop.f32.mrf.mxu1 }
 0x1d7   : > { %v666_v29 = vadd.f32 %v962_v8, %v537_v28 }
 0x1d8   : > { %v660_v9 = vpop.f32.mrf.mxu1 }
 0x1d9   : > { %v661_v31 = vadd.f32 %v660_v9, %v532_v30 }
 0x1da   : > { %v965_v11 = vpop.f32.mrf.mxu1 }
 0x1db   : > { %v676_v26 = vadd.f32 %v965_v11, %v547_v23 }
 0x1dc   : > { %v670_v13 = vpop.f32.mrf.mxu1 }
 0x1dd   : > { %v671_v27 = vadd.f32 %v670_v13, %v542_v25 }
 0x1de   : > { %v968_v14 = vpop.f32.mrf.mxu1 }
 0x1df   : > { %v686_v21 = vadd.f32 %v968_v14, %v557_v15 }
 0x1e0   : > { %v680_v16 = vpop.f32.mrf.mxu1 }
 0x1e1   : > { %v681_v24 = vadd.f32 %v680_v16, %v552_v17 }
 0x1e2   : > { %v971_v18 = vpop.f32.mrf.mxu1 }
 0x1e3   : > { %v696_v19 = vadd.f32 %v971_v18, %v567_v10 }
 0x1e4   : > { %v690_v20 = vpop.f32.mrf.mxu1 }
 0x1e5   : > { %1051 = vtanh.f32 %v696_v19  ;;  %v691_v22 = vadd.f32 %v690_v20, %v562_v12 }
 0x1e7   : > { %1053 = vtanh.f32 %v691_v22 }
 0x1e8   : > { %1055 = vtanh.f32 %v686_v21 }
 0x1e9   : > { %1057 = vtanh.f32 %v681_v24 }
 0x1ea   : > { %1059 = vtanh.f32 %v676_v26 }
 0x1eb   : > { %1061 = vtanh.f32 %v671_v27 }
 0x1ec   : > { %1063 = vtanh.f32 %v666_v29 }
 0x1ed   : > { %1065 = vtanh.f32 %v661_v31 }
 0x1f2   : > { %v1052_v32 = vpop.eup %1051 }
 0x1f3   : > { %973 = vmatpush3.msra.mxu0 %v1052_v32 }
 0x1f4   : > { %v1054_v33 = vpop.eup %1053  ;;  %974 = vmatprep.subr.mxu0 %v1130_v7 }
 0x1f5   : > { %975 = vmatpush3.msra.mxu0 %v1054_v33  ;;  %v1056_v34 = vpop.eup %1055 }
 0x1f6   : > { %976 = vmatprep.subr.mxu0 %v1130_v7  ;;  %v1058_v35 = vpop.eup %1057 }
 0x1f7   : > { %977 = vmatpush3.msra.mxu0 %v1056_v34  ;;  %v1060_v36 = vpop.eup %1059 }
 0x1f8   : > { %978 = vmatprep.subr.mxu0 %v1130_v7  ;;  %v1062_v37 = vpop.eup %1061 }
 0x1f9   : > { %979 = vmatpush3.msra.mxu0 %v1058_v35  ;;  %v1064_v38 = vpop.eup %1063 }
 0x1fa   : > { %980 = vmatprep.subr.mxu0 %v1130_v7  ;;  %v1066_v40 = vpop.eup %1065 }
 0x1fb   : > { %981 = vmatpush3.msra.mxu0 %v1060_v36 }
 0x1fc   : > { %982 = vmatprep.subr.mxu0 %v1130_v7 }
 0x1fd   : > { %983 = vmatpush3.msra.mxu0 %v1062_v37 }
 0x1fe   : > { %984 = vmatprep.subr.mxu0 %v1130_v7 }
 0x1ff   : > { %985 = vmatpush3.msra.mxu0 %v1064_v38 }
 0x200   : > { %986 = vmatprep.subr.mxu0 %v1130_v7 }
 0x201   : > { %987 = vmatpush3.msra.mxu0 %v1066_v40 }
 0x202   : > { %989 = vmatmul.mubr.msk.f32.vlgmr.msra.gmra.mxu0 %vm569_vm1, %v707_v39 }
 0x2c2   : > { %v787_v46 = vpop.f32.mrf.mxu0 }
 0x2c3   : > { %v788_v47 = vadd.f32 %v787_v46, %v717_v45 }
 0x2c4   : > { %v990_v48 = vpop.f32.mrf.mxu0 }
 0x2c5   : > { %791 = vst [vmem:[%s316_s20] sm:$0x1] %v788_v47 }
 0x2c6   : > { %1080 = shalt.err (!%p1077_p5)
}
 0x2c7   : > { %s1081_s15 = scalar_lea.hbm %s1358_s25, 16  ;;  %s1085_s17 = scalar_lea.hbm %s1402_s7, 32 }
 0x2c8   : > { %p1082_p7 = scmp.ne.s32.totalorder %s1358_s25, %s1081_s15  ;;  %p1086_p12 = scmp.lt.s32.totalorder %s1358_s25, %s1402_s7 }
 0x2c9   : > { %p1087_p13 = scmp.lt.s32.totalorder %s1085_s17, %s1081_s15 }
 0x2ca   : > { %p1083_p10 = pnand %p1082_p7, %p1214_p6 }
 0x2cb   : > { %p1088_p0 = por %p1087_p13, %p1086_p12 }
 0x2cc   : > { %p1084_p11 = pneg %p1083_p10 }
 0x2ce   : > { %p1089_p1 = pnand %p1088_p0, %p1084_p11 }
 0x2d0   : > { %1092 = shalt.err (!%p1089_p1)
}
 0x2d1   : > { %991 = dma.vmem_to_hbm [thread:$0]  (%p1214_p6), %s806_s22, 16, %s1358_s25, %s793_s30  }
 0x2d2 PF: > { %s817_s20 = sand.u32 1, %s1115_s26   ;;  %p994_p2 = pnand %p868_p9, %p1218_p8 }
 0x2d3   : > { %s818_s23 = scalar_lea.sflag [#allocation5], %s817_s20 }
 0x2d4   : > { %p995_p3 = pneg %p994_p2 }
 0x2d6   : > { %1110 = dma.done.wait (%p995_p3), %s818_s23, 16  }
 0x2d7   : > { %1112 = vsyncadd (%p995_p3), %s818_s23, 4294967280  ;;  %p19_p4 = scmp.ge.s32.totalorder %s1199_s8, 4   ;;  %s1405_s26 = smov %s1119_s27 }
 0x2d8   : > { %s1406_s27 = smov %s1123_s28  ;;  %s1407_s28 = smov %s1212_s11 }
 0x2d9   : > { %s1408_s29 = smov %s1199_s8  ;;  %21 = sbr.rel (!%p19_p4) target bundleno = 6 (0x6), region = 126 }
 0x2de   :  { %822 = vsyncpa [#allocation5], 1 }
 0x2df   :  { %824 = vsyncpa [#allocation5 + $0x1], 1 }

</bundles_post_ra>
